<compile_context>
chip_gen: v6e
topology: v6e:2x2x1
jax: 0.10.0
libtpu: 0.0.40
codegen_flags: <defaults>
</compile_context>

<pallas_src>
import jax
import jax.numpy as jnp
from jax.experimental import pallas as pl
from jax.experimental.pallas import tpu as pltpu  # noqa: F401


def _attention_kernel(x_ref, wqkv_ref, bias_ref, o_ref):
    E = o_ref.shape[1]

    # Fused QKV projection: x(S,E) @ Wqkv(E,3E) -> (S,3E), f32 accumulation.
    # x is cast to bf16 in-kernel (one tiny VMEM-resident cast; matches the
    # bf16 weight and avoids a separate wrapper convert op).
    qkv = jnp.dot(x_ref[...].astype(jnp.bfloat16), wqkv_ref[...],
                  preferred_element_type=jnp.float32)
    q = qkv[:, :E]
    k = qkv[:, E:2 * E]
    v = qkv[:, 2 * E:]

    # similarity = Q @ K^T: contract last dims (no explicit transpose); operands
    # stay f32 — already in VMEM, MXU is nowhere near throughput-bound here.
    sim = jax.lax.dot_general(
        q, k,
        dimension_numbers=(((1,), (1,)), ((), ())),
        preferred_element_type=jnp.float32)

    # masked_fill(mask, -1e9) as a precomputed additive bias -> single vadd.
    sim = sim + bias_ref[...]

    # softmax over dim=0 (each column sums to 1) — matches torch softmax(dim=0).
    col_max = jnp.max(sim, axis=0, keepdims=True)
    e = jnp.exp(sim - col_max)
    denom = jnp.sum(e, axis=0, keepdims=True)
    attn = e / denom

    # attention_score = attn @ V -> (S, E), f32 throughout.
    o_ref[...] = jnp.dot(attn, v,
                         preferred_element_type=jnp.float32).astype(o_ref.dtype)


def prepare_attention_params(wq, wk, wv):
    """One-time (init-time) prep: fuse PyTorch (out,in) weights, pre-transpose
    to (E, 3E) and cast to bf16 so the kernel consumes them directly.
    Do NOT call this per forward pass."""
    return jnp.concatenate([wq, wk, wv], axis=0).T.astype(jnp.bfloat16)  # (E, 3E)


def prepare_mask_bias(mask):
    """One-time prep for a static mask: bool (S,S) -> additive f32 bias
    (-1e9 where masked, 0 elsewhere)."""
    return jnp.where(mask, jnp.float32(-1e9), jnp.float32(0.0))


def attention_forward(x, wqkv_bf16, mask_bias=None):
    """x: (S, E) f32; wqkv_bf16: (E, 3E) bf16 from prepare_attention_params;
    mask_bias: (S, S) f32 additive bias from prepare_mask_bias (or None)."""
    S, E = x.shape
    if mask_bias is None:  # mirrors the `if mask != None` branch of the module
        mask_bias = jnp.zeros((S, S), jnp.float32)

    # Small problem: single grid step, full-array blocks (block == full array
    # dims, so no (8,128) padding constraints apply). A grid here would only
    # add ~0.35 us/step overhead with nothing to pipeline.
    full = lambda shape: pl.BlockSpec(shape, lambda: tuple(0 for _ in shape))

    cost = pl.CostEstimate(
        flops=2 * S * E * (3 * E) + 2 * S * S * E + 2 * S * S * E,
        transcendentals=S * S,
        bytes_accessed=(S * E * 4            # x (f32)
                        + E * 3 * E * 2      # fused Wqkv (bf16)
                        + S * S * 4          # mask bias (f32)
                        + S * E * 4),        # out (f32)
    )

    return pl.pallas_call(
        _attention_kernel,
        out_shape=jax.ShapeDtypeStruct((S, E), jnp.float32),
        grid=(),
        in_specs=[
            full((S, E)),       # x (f32; cast to bf16 in-kernel)
            full((E, 3 * E)),   # fused, pre-transposed Wqkv (bf16)
            full((S, S)),       # additive mask bias (f32)
        ],
        out_specs=full((S, E)),
        cost_estimate=cost,
    )(x, wqkv_bf16, mask_bias)


def _reference(x, wq, wk, wv, mask):
    # Pure-f32, PyTorch-faithful reference.
    q = x @ wq.T
    k = x @ wk.T
    v = x @ wv.T
    sim = q @ k.T
    sim = jnp.where(mask, -1e9, sim)
    attn = jax.nn.softmax(sim, axis=0)
    return attn @ v


if __name__ == "__main__":
    SEQ = 8
    EMBED = 128  # embedding_size

    key = jax.random.PRNGKey(0)
    kx, kq, kk, kv, km = jax.random.split(key, 5)

    # Deterministic parameter init (PyTorch Linear default: U(-1/sqrt(in), 1/sqrt(in)))
    bound = 1.0 / (EMBED ** 0.5)
    wq = jax.random.uniform(kq, (EMBED, EMBED), jnp.float32, -bound, bound)
    wk = jax.random.uniform(kk, (EMBED, EMBED), jnp.float32, -bound, bound)
    wv = jax.random.uniform(kv, (EMBED, EMBED), jnp.float32, -bound, bound)

    x = jax.random.normal(kx, (SEQ, EMBED), jnp.float32)
    mask = jax.random.bernoulli(km, 0.25, (SEQ, SEQ))  # bool mask, True -> -1e9

    # ---- one-time prep (hoisted out of the per-call hot path) ----
    wqkv = prepare_attention_params(wq, wk, wv)     # (E, 3E) bf16, cached
    mask_bias = prepare_mask_bias(mask)             # (S, S) f32 additive bias

    # ---- forward ----
    out = attention_forward(x, wqkv, mask_bias)
    out = jax.block_until_ready(out)

    ref = _reference(x, wq, wk, wv, mask)
    assert out.shape == (SEQ, EMBED)
    # Only x / Wqkv are quantized to bf16 (single rounding, f32 accumulation);
    # everything downstream is exact f32.
    assert jnp.allclose(out, ref, atol=3e-2, rtol=3e-2), "mismatch vs JAX reference"

    # Extra case from the correctness review: a fully-masked column must yield
    # a uniform softmax column (all -1e9 -> exp(0)/S), matching PyTorch.
    mask_full_col = mask.at[:, 0].set(True)
    out2 = jax.block_until_ready(
        attention_forward(x, wqkv, prepare_mask_bias(mask_full_col)))
    ref2 = _reference(x, wq, wk, wv, mask_full_col)
    assert jnp.allclose(out2, ref2, atol=3e-2, rtol=3e-2), "mismatch (masked column)"

    print("KERNEL_OK")
</pallas_src>

<mosaic_0001>
module attributes {stable_mosaic.version = 11 : i64} {
  func.func @_attention_kernel(%arg0: memref<8x128xf32, #tpu.memory_space<vmem>>, %arg1: memref<128x384xbf16, #tpu.memory_space<vmem>>, %arg2: memref<8x8xf32, #tpu.memory_space<vmem>>, %arg3: memref<8x128xf32, #tpu.memory_space<vmem>>) attributes {dimension_semantics = [], scalar_prefetch = 0 : i64, scratch_operands = 0 : i64, tpu.core_type = #tpu.core_type<tc>} {
    %c0 = arith.constant 0 : index
    %c0_0 = arith.constant 0 : index
    %0 = vector.load %arg0[%c0, %c0_0] : memref<8x128xf32, #tpu.memory_space<vmem>>, vector<8x128xf32>
    %1 = arith.truncf %0 : vector<8x128xf32> to vector<8x128xbf16>
    %c0_1 = arith.constant 0 : index
    %c0_2 = arith.constant 0 : index
    %2 = vector.load %arg1[%c0_1, %c0_2] : memref<128x384xbf16, #tpu.memory_space<vmem>>, vector<128x384xbf16>
    %cst = arith.constant dense<0.000000e+00> : vector<8x384xf32>
    %3 = tpu.matmul %1, %2, %cst {dimension_numbers = #tpu.dot_dimension_numbers<[1], [0], [0], [1], [0, 0, 1, 1], [], []>} : vector<8x128xbf16>, vector<128x384xbf16>, vector<8x384xf32> -> vector<8x384xf32>
    %4 = vector.extract_strided_slice %3 {offsets = [0, 0], sizes = [8, 128], strides = [1, 1]} : vector<8x384xf32> to vector<8x128xf32>
    %5 = vector.extract_strided_slice %3 {offsets = [0, 128], sizes = [8, 128], strides = [1, 1]} : vector<8x384xf32> to vector<8x128xf32>
    %6 = vector.extract_strided_slice %3 {offsets = [0, 256], sizes = [8, 128], strides = [1, 1]} : vector<8x384xf32> to vector<8x128xf32>
    %cst_3 = arith.constant dense<0.000000e+00> : vector<8x8xf32>
    %7 = tpu.matmul %4, %5, %cst_3 {dimension_numbers = #tpu.dot_dimension_numbers<[1], [1], [0], [0], [0, 0, 1, 0], [], []>} : vector<8x128xf32>, vector<8x128xf32>, vector<8x8xf32> -> vector<8x8xf32>
    %c0_4 = arith.constant 0 : index
    %c0_5 = arith.constant 0 : index
    %8 = vector.load %arg2[%c0_4, %c0_5] : memref<8x8xf32, #tpu.memory_space<vmem>>, vector<8x8xf32>
    %9 = arith.addf %7, %8 : vector<8x8xf32>
    %cst_6 = arith.constant dense<0xFF800000> : vector<8xf32>
    %10 = vector.multi_reduction <maximumf>, %9, %cst_6 [0] : vector<8x8xf32> to vector<8xf32>
    %11 = vector.shape_cast %10 : vector<8xf32> to vector<1x8xf32>
    %12 = vector.broadcast %11 : vector<1x8xf32> to vector<8x8xf32>
    %13 = arith.subf %9, %12 : vector<8x8xf32>
    %14 = math.exp %13 : vector<8x8xf32>
    %cst_7 = arith.constant dense<0.000000e+00> : vector<8xf32>
    %15 = vector.multi_reduction <add>, %14, %cst_7 [0] : vector<8x8xf32> to vector<8xf32>
    %16 = vector.shape_cast %15 : vector<8xf32> to vector<1x8xf32>
    %17 = vector.broadcast %16 : vector<1x8xf32> to vector<8x8xf32>
    %18 = arith.divf %14, %17 : vector<8x8xf32>
    %cst_8 = arith.constant dense<0.000000e+00> : vector<8x128xf32>
    %19 = tpu.matmul %18, %6, %cst_8 {dimension_numbers = #tpu.dot_dimension_numbers<[1], [0], [0], [1], [0, 0, 1, 1], [], []>} : vector<8x8xf32>, vector<8x128xf32>, vector<8x128xf32> -> vector<8x128xf32>
    %c0_9 = arith.constant 0 : index
    %c0_10 = arith.constant 0 : index
    %20 = vector.load %arg3[%c0_9, %c0_10] : memref<8x128xf32, #tpu.memory_space<vmem>>, vector<8x128xf32>
    tpu.vector_store %arg3[%c0_9, %c0_10], %19 {strides = array<i32>} : memref<8x128xf32, #tpu.memory_space<vmem>>, vector<8x128xf32>,
    return
  }
}

</mosaic_0001>

<bundles_post_ra>
// kernel: tpu_custom_call.1
= control target key start
LH: loop header
LB: loop body
LE: loop exit
PB: predicated region body
PF: predicated region fallthrough
CT: control target
= control target key end

     0   :  { %8 = vsyncpa [#allocation3], 0  ;;  %s723_s0 = inlined_call_operand.hbm [shape: f32[8,128], index: 0, kind: input, shape index: {}]   ;;  %s724_s1 = inlined_call_operand.hbm [shape: bf16[128,384], index: 1, kind: input, shape index: {}]   ;;  %s725_s2 = inlined_call_operand.hbm [shape: f32[8,8], index: 2, kind: input, shape index: {}]   ;;  %s726_s3 = inlined_call_operand.hbm [shape: f32[8,128], index: 3, kind: output, shape index: {}]  }
   0x1   :  { %9 = vsyncpa [#allocation6], 0 }
   0x2   :  { %10 = vsyncpa [#allocation4], 0  ;;  %s676_s12 = smov [#allocation5]  }
   0x3   :  { %s26_s13 = sshll.u32 %s676_s12, 4  ;;  %s27_s13 = int_to_ptr.vmem [resolvable:$true] %s26_s13 }
   0x4   :  { %s598_s14 = scalar_lea.vmem %s27_s13, 3072  ;;  %p603_p1 = scmp.lt.s32.totalorder %s27_s13, %s27_s13 }
   0x5   :  { %p599_p0 = scmp.ne.s32.totalorder %s27_s13, %s598_s14  ;;  %p604_p2 = scmp.lt.s32.totalorder %s598_s14, %s598_s14 }
   0x7   :  { %p605_p3 = por %p604_p2, %p603_p1 }
   0x9   :  { %p606_p4 = pnand %p605_p3, %p599_p0 }
   0xb   :  { %609 = shalt.err (!%p606_p4)
}
   0xc   :  { %s677_s15 = smov 192   ;;  %s678_s16 = smov 12  }
   0xd   :  { %32 = dma.hbm_to_vmem [thread:$0]  %s724_s1, 3072, %s27_s13, [#allocation6], %s677_s15, %s677_s15, %s678_s16  }
   0xe   :  { %s679_s19 = smov [#allocation2]   ;;  %s680_s21 = smov [#allocation7]  }
   0xf   :  { %s17_s20 = sshll.u32 %s679_s19, 4  ;;  %s39_s22 = sshll.u32 %s680_s21, 4  ;;  %s18_s20 = int_to_ptr.vmem [resolvable:$true] %s17_s20  ;;  %s40_s22 = int_to_ptr.vmem [resolvable:$true] %s39_s22 }
  0x10   :  { %s618_s23 = scalar_lea.vmem %s18_s20, 128  ;;  %p623_p6 = scmp.lt.s32.totalorder %s18_s20, %s18_s20 }
  0x11   :  { %p619_p5 = scmp.ne.s32.totalorder %s18_s20, %s618_s23  ;;  %p624_p7 = scmp.lt.s32.totalorder %s618_s23, %s618_s23 }
  0x13   :  { %p625_p8 = por %p624_p7, %p623_p6 }
  0x15   :  { %p626_p9 = pnand %p625_p8, %p619_p5 }
  0x17   :  { %629 = shalt.err (!%p626_p9)
}
  0x18   :  { %20 = dma.hbm_to_vmem [thread:$0]  %s723_s0, 128, %s18_s20, [#allocation3]  }
  0x19   :  { %s638_s26 = scalar_lea.vmem %s40_s22, 128  ;;  %p643_p11 = scmp.lt.s32.totalorder %s40_s22, %s40_s22 }
  0x1a   :  { %p639_p10 = scmp.ne.s32.totalorder %s40_s22, %s638_s26  ;;  %p644_p12 = scmp.lt.s32.totalorder %s638_s26, %s638_s26 }
  0x1c   :  { %p645_p13 = por %p644_p12, %p643_p11 }
  0x1e   :  { %p646_p0 = pnand %p645_p13, %p639_p10 }
  0x20   :  { %649 = shalt.err (!%p646_p0)
}
  0x21   :  { %42 = dma.hbm_to_vmem [thread:$0]  %s725_s2, 128, %s40_s22, [#allocation6]  }
  0x22   :  { %670 = dma.done.wait [#allocation3], 128  }
  0x23   :  { %671 = vsyncadd [#allocation3], 4294967168 }
  0x24   :  { %672 = dma.done.wait [#allocation6], 3200  }
  0x25   :  { %673 = vsyncadd [#allocation6], 4294964096  ;;  %v681_v0 = vmov 0   ;;  %v554_v1 = vld [vmem:[#allocation5 + $0xac] ss:$12 sps:$4 sm:$0xff]   ;;  %v682_v19 = vmov 0.0  }
  0x26   :  { %247 = vmatprep.mubr.bf16.mxu0 %v681_v0  ;;  %v556_v2 = vld [vmem:[#allocation5 + $0xa8] ss:$12 sps:$4 sm:$0xff]   ;;  %215 = vmatprep.subr.bf16.mxu0 %v554_v1  ;;  %v559_v4 = vld [vmem:[#allocation5 + $0x90] ss:$12 sps:$4 sm:$0xff]   ;;  %v562_v6 = vld [vmem:[#allocation5 + $0x78] ss:$12 sps:$4 sm:$0xff]  }
  0x27   :  { %v557_v3 = vld [vmem:[#allocation5 + $0x94] ss:$12 sps:$4 sm:$0xff]   ;;  %216 = vmatpush1.bf16.msra.mxu0 %v556_v2  ;;  %v560_v5 = vld [vmem:[#allocation5 + $0x7c] ss:$12 sps:$4 sm:$0xff]   ;;  %v563_v7 = vld [vmem:[#allocation5 + $0x64] ss:$12 sps:$4 sm:$0xff]   ;;  %515 = vmatprep.subr.bf16.mxu1 %v682_v19 }
  0x28   :  { %217 = vmatprep.subr.bf16.mxu0 %v557_v3  ;;  %v565_v8 = vld [vmem:[#allocation5 + $0x60] ss:$12 sps:$4 sm:$0xff]   ;;  %v568_v10 = vld [vmem:[#allocation5 + $0x48] ss:$12 sps:$4 sm:$0xff]   ;;  %v571_v12 = vld [vmem:[#allocation5 + $0x30] ss:$12 sps:$4 sm:$0xff]  }
  0x29   :  { %v566_v9 = vld [vmem:[#allocation5 + $0x4c] ss:$12 sps:$4 sm:$0xff]   ;;  %v569_v11 = vld [vmem:[#allocation5 + $0x34] ss:$12 sps:$4 sm:$0xff]   ;;  %v572_v13 = vld [vmem:[#allocation5 + $0x1c] ss:$12 sps:$4 sm:$0xff]  }
  0x2a   :  { %v574_v14 = vld [vmem:[#allocation5 + $0x18] ss:$12 sps:$4 sm:$0xff]   ;;  %v577_v16 = vld [vmem:[#allocation5] ss:$12 sps:$4 sm:$0xff]   ;;  %vm683_vm0 = vmmov 0   ;;  %vm367_vm1 = vcmask 64512  }
  0x2b   :  { %218 = vmatpush1.bf16.msra.mxu0 %v559_v4  ;;  %v575_v15 = vld [vmem:[#allocation5 + $0x4] ss:$12 sps:$4 sm:$0xff]   ;;  %v53_v17 = vld [vmem:[#allocation2] sm:$0xff]  ;;  %531 = vmatprep.mubr.msk.bf16.mxu1 %vm683_vm0, %v682_v19  ;;  %v580_v22 = vld [vmem:[#allocation5 + $0x80] ss:$12 sps:$4 sm:$0xff]   ;;  %s684_s0 = smov [#allocation8]  }
  0x2c   :  { %219 = vmatprep.subr.bf16.mxu0 %v560_v5  ;;  %v54_v18 = vpack.c.bf16 %v53_v17, %v53_v17  ;;  %v578_v20 = vld [vmem:[#allocation5 + $0xb0] ss:$12 sps:$4 sm:$0xff]   ;;  %v579_v21 = vld [vmem:[#allocation5 + $0x98] ss:$12 sps:$4 sm:$0xff]   ;;  %v581_v23 = vld [vmem:[#allocation5 + $0x68] ss:$12 sps:$4 sm:$0xff]  }
  0x2d   :  { %516 = vmatpush3.bf16.msra.mxu1 %v578_v20  ;;  %v582_v24 = vld [vmem:[#allocation5 + $0x50] ss:$12 sps:$4 sm:$0xff]   ;;  %v583_v25 = vld [vmem:[#allocation5 + $0x38] ss:$12 sps:$4 sm:$0xff]   ;;  %v584_v26 = vld [vmem:[#allocation5 + $0x20] ss:$12 sps:$4 sm:$0xff]  }
  0x2e   :  { %517 = vmatprep.subr.bf16.mxu1 %v682_v19  ;;  %v585_v27 = vld [vmem:[#allocation5 + $0x8] ss:$12 sps:$4 sm:$0xff]   ;;  %v296_v36 = vld [vmem:[#allocation7] sm:$0xff]  ;;  %s467_s2 = sshll.u32 %s684_s0, 4  ;;  %s468_s2 = int_to_ptr.vmem [resolvable:$true] %s467_s2 }
  0x2f   :  { %220 = vmatpush1.bf16.msra.mxu0 %v562_v6  ;;  %s650_s28 = scalar_lea.vmem %s468_s2, 128  ;;  %p655_p2 = scmp.lt.s32.totalorder %s468_s2, %s468_s2 }
  0x30   :  { %221 = vmatprep.subr.bf16.mxu0 %v563_v7  ;;  %p651_p1 = scmp.ne.s32.totalorder %s468_s2, %s650_s28  ;;  %p656_p3 = scmp.lt.s32.totalorder %s650_s28, %s650_s28 }
  0x31   :  { %518 = vmatpush3.bf16.msra.mxu1 %v579_v21 }
  0x32   :  { %519 = vmatprep.subr.bf16.mxu1 %v682_v19  ;;  %p657_p4 = por %p656_p3, %p655_p2 }
  0x33   :  { %222 = vmatpush1.bf16.msra.mxu0 %v565_v8 }
  0x34   :  { %223 = vmatprep.subr.bf16.mxu0 %v566_v9  ;;  %p658_p5 = pnand %p657_p4, %p651_p1 }
  0x35   :  { %520 = vmatpush3.bf16.msra.mxu1 %v580_v22 }
  0x36   :  { %521 = vmatprep.subr.bf16.mxu1 %v682_v19 }
  0x37   :  { %224 = vmatpush1.bf16.msra.mxu0 %v568_v10 }
  0x38   :  { %225 = vmatprep.subr.bf16.mxu0 %v569_v11 }
  0x39   :  { %522 = vmatpush3.bf16.msra.mxu1 %v581_v23 }
  0x3a   :  { %523 = vmatprep.subr.bf16.mxu1 %v682_v19 }
  0x3b   :  { %226 = vmatpush1.bf16.msra.mxu0 %v571_v12 }
  0x3c   :  { %227 = vmatprep.subr.bf16.mxu0 %v572_v13 }
  0x3d   :  { %524 = vmatpush3.bf16.msra.mxu1 %v582_v24 }
  0x3e   :  { %525 = vmatprep.subr.bf16.mxu1 %v682_v19 }
  0x3f   :  { %228 = vmatpush1.bf16.msra.mxu0 %v574_v14 }
  0x40   :  { %229 = vmatprep.subr.bf16.mxu0 %v575_v15 }
  0x41   :  { %526 = vmatpush3.bf16.msra.mxu1 %v583_v25 }
  0x42   :  { %527 = vmatprep.subr.bf16.mxu1 %v682_v19 }
  0x43   :  { %230 = vmatpush1.bf16.msra.mxu0 %v577_v16 }
  0x44   :  { %535 = vmatprep.subr.mxu0 %v682_v19 }
  0x45   :  { %528 = vmatpush3.bf16.msra.mxu1 %v584_v26 }
  0x46   :  { %248 = vmatmul.mubr.bf16.vlgmr.msra.gmra.mxu0 %v54_v18  ;;  %529 = vmatprep.subr.bf16.mxu1 %v682_v19 }
  0x47   :  { %537 = vmatprep.mubr.msk.f32.mxu0 %vm683_vm0, %v682_v19 }
  0x49   :  { %530 = vmatpush3.bf16.msra.mxu1 %v585_v27 }
  0x4a   :  { %540 = vmatprep.subr.mxu1 %v682_v19 }
  0x4c   :  { %532 = vmatmul.mubr.bf16.vlgmr.msra.gmra.mxu1 %v54_v18 }
  0x4d   :  { %542 = vmatprep.mubr.msk.f32.mxu1 %vm683_vm0, %v682_v19 }
 0x106   :  { %v249_v28 = vpop.f32.mrf.mxu0 }
 0x108   :  { %v251_v29 = vpop.f32.mrf.mxu0 }
 0x109   :  { %536 = vmatpush3.xpose.msra.mxu0 %v251_v29 }
 0x10a   :  { %v253_v30 = vpop.f32.mrf.mxu0 }
 0x10c   :  { %v254_v31 = vpop.f32.mrf.mxu0  ;;  %538 = vmatmul.mubr.f32.vlgmr.msra.gmra.mxu0 %v249_v28  ;;  %v290_v32 = vpop.f32.mrf.mxu1 }
 0x10d   :  { %541 = vmatpush3.msra.mxu1 %v290_v32 }
 0x10e   :  { %v533_v33 = vpop.f32.mrf.mxu1 }
 0x110   :  { %v293_v34 = vpop.f32.mrf.mxu1 }
 0x112   :  { %v534_v35 = vpop.f32.mrf.mxu1 }
 0x1cc   :  { %v363_v37 = vpop.f32.mrf.mxu0 }
 0x1cd   :  { %v364_v38 = vadd.f32 %v363_v37, %v296_v36 }
 0x1ce   :  { %v539_v39 = vpop.f32.mrf.mxu0 }
 0x1cf   :  { %v368_v40 = vsel %vm367_vm1, %v364_v38, -inf }
 0x1d0   :  { %v369_v41 = vrot.slane %v368_v40, 4 }
 0x1d2   :  { %v370_v42 = vmax.f32 %v368_v40, %v369_v41 }
 0x1d4   :  { %v371_v43 = vrot.slane %v370_v42, 2 }
 0x1d6   :  { %v372_v44 = vmax.f32 %v370_v42, %v371_v43 }
 0x1d8   :  { %v373_v45 = vrot.slane %v372_v44, 1 }
 0x1da   :  { %v374_v46 = vmax.f32 %v372_v44, %v373_v45 }
 0x1dc   :  { %v375_v47 = vsub.f32 %v364_v38, %v374_v46 }
 0x1de   :  { %v376_v48 = vmul.f32 1.442695, %v375_v47 }
 0x1e0   :  { %586 = vpow2.f32 %v376_v48 }
 0x1ed   :  { %v587_v49 = vpop.eup %586 }
 0x1ee   :  { %v378_v50 = vsel %vm367_vm1, %v587_v49, 0.0 }
 0x1ef   :  { %v379_v51 = vrot.slane %v378_v50, 4 }
 0x1f1   :  { %v380_v52 = vadd.f32 %v379_v51, %v378_v50 }
 0x1f3   :  { %v381_v53 = vrot.slane %v380_v52, 2 }
 0x1f5   :  { %v382_v54 = vadd.f32 %v381_v53, %v380_v52 }
 0x1f7   :  { %v383_v55 = vrot.slane %v382_v54, 1 }
 0x1f9   :  { %v384_v56 = vadd.f32 %v383_v55, %v382_v54 }
 0x1fb   :  { %588 = vrcp.f32 %v384_v56 }
 0x208   :  { %v589_v57 = vpop.eup %588 }
 0x209   :  { %v386_v58 = vmul.f32 %v589_v57, %v587_v49 }
 0x20b   :  { %543 = vmatmul.mubr.msk.f32.vlgmr.msra.gmra.mxu1 %vm367_vm1, %v386_v58 }
 0x2cb   :  { %v456_v59 = vpop.f32.mrf.mxu1 }
 0x2cc   :  { %460 = vst [vmem:[#allocation8] sm:$0xff] %v456_v59 }
 0x2cd   :  { %v544_v60 = vpop.f32.mrf.mxu1 }
 0x2ce   :  { %661 = shalt.err (!%p658_p5)
}
 0x2cf   :  { %470 = dma.vmem_to_hbm [thread:$0]  %s468_s2, 128, %s726_s3, [#allocation4]  }
 0x2d0   :  { %674 = dma.done.wait [#allocation4], 128  }
 0x2d1   :  { %675 = vsyncadd [#allocation4], 4294967168 }
 0x2d2   :  { %474 = vsyncpa [#allocation3], 1 }
 0x2d3   :  { %475 = vsyncpa [#allocation6], 1 }
 0x2d4   :  { %476 = vsyncpa [#allocation4], 1 }

</bundles_post_ra>
